<compile_context>
chip_gen: v6e
topology: v6e:2x2x1
jax: 0.10.0
libtpu: 0.0.40
codegen_flags: <defaults>
</compile_context>

<pallas_src>
import numpy as np

import jax
import jax.numpy as jnp
from jax import lax
from jax.experimental import pallas as pl
from jax.experimental.pallas import tpu as pltpu


_HALF_PI_F32 = np.float32(np.pi / 2.0)


def _pe_kernel(f_ref, u_ref, v_ref, o_ref, s_scr, c_scr):
    """Compute one (tile_rows, d_model) tile of the sinusoidal table.

    f_ref : (1, D)  inv_freq per column (f64-accurate, rounded to f32).
    u_ref : (8, D)  parity-folded table:  odd col -> -sin(r*f), even col -> cos(r*f)
    v_ref : (8, D)  parity-folded table:  odd col ->  cos(r*f), even col -> sin(r*f)
    o_ref : (R, D)  output tile (R is a multiple of 8).
    s_scr, c_scr : (R//8, D) f32 scratch holding sin/cos of the per-8-row base angle.
    """
    rows, _ = o_ref.shape
    q_blocks = rows // 8

    # Base angle for every 8-row block of this tile, packed as (Q, D): one sin
    # polynomial per 8 output rows instead of one per row (VALU amortization).
    base_pos = (pl.program_id(0) * rows
                + 8 * lax.broadcasted_iota(jnp.int32, (q_blocks, 1), 0)
                ).astype(jnp.float32)                              # (Q, 1)
    base_angle = base_pos * f_ref[...]                             # (Q, D)
    s_scr[...] = jnp.sin(base_angle)
    # cos(x) == sin(x + pi/2).  The shift's rounding is O(ulp(angle)) — the same
    # order as the unavoidable f32 angle rounding; see the tolerance discussion
    # in __main__.  Using sin only keeps the kernel on the proven lowering path.
    c_scr[...] = jnp.sin(base_angle + _HALF_PI_F32)

    def body(q, carry):
        row0 = pl.multiple_of(q * 8, 8)
        s_q = s_scr[pl.ds(q, 1), :]                                # (1, D) = sin(base)
        c_q = c_scr[pl.ds(q, 1), :]                                # (1, D) = cos(base)
        # Exact angle-addition, parity folded into U/V:
        #   even col: sin(base + r*f) = sin(base)*cos(r*f) + cos(base)*sin(r*f)
        #   odd  col: cos(base + r*f) = cos(base)*cos(r*f) - sin(base)*sin(r*f)
        tile8 = s_q * u_ref[...] + c_q * v_ref[...]                # (8, D): 3 VALU ops/elem
        o_ref[pl.ds(row0, 8), :] = tile8.astype(o_ref.dtype)
        return carry

    lax.fori_loop(0, q_blocks, body, 0)


def build_sinusoidal_table(d_model: int, max_len: int, dtype=jnp.float32) -> jax.Array:
    """Build the full (max_len, d_model) table with a Pallas kernel (called once)."""
    assert d_model >= 2 and d_model % 2 == 0, "d_model must be even (sin/cos pairs)"
    assert max_len >= 1

    # ---- Host-side column constants (float64 -> float32; exact to f32 rounding) ----
    col = np.arange(d_model)
    two_i = (col // 2) * 2
    inv_freq64 = np.power(10000.0, -(two_i.astype(np.float64) / float(d_model)))   # (D,)
    odd = (col % 2) == 1
    r = np.arange(8, dtype=np.float64)[:, None]                                    # (8, 1)
    rb = r * inv_freq64[None, :]                                                   # (8, D)
    sr, cr = np.sin(rb), np.cos(rb)
    u_tab = np.where(odd[None, :], -sr, cr).astype(np.float32)                     # (8, D)
    v_tab = np.where(odd[None, :], cr, sr).astype(np.float32)                      # (8, D)
    f_tab = inv_freq64.astype(np.float32)[None, :]                                 # (1, D)

    # ---- Row tiling: byte-budgeted (~3 MiB/buffer), multiple of 8 (16 for bf16),
    #      and keep >= 2 grid steps so v7x's two TensorCores both get work. ----
    itemsize = jnp.dtype(dtype).itemsize
    mult = 16 if itemsize < 4 else 8
    def _rup(x, m): return ((x + m - 1) // m) * m
    rows_needed = _rup(max_len, mult)
    target_tile_bytes = 3 << 20
    by_budget = max(mult, target_tile_bytes // max(1, d_model * itemsize))
    tile_rows = max(mult, (min(rows_needed, by_budget) // mult) * mult)
    if tile_rows >= rows_needed and rows_needed > mult:
        tile_rows = _rup(rows_needed // 2, mult)      # keep the grid at >= 2 steps
    grid = (pl.cdiv(max_len, tile_rows),)
    q_blocks = tile_rows // 8

    cost = pl.CostEstimate(
        flops=3 * max_len * d_model + 2 * pl.cdiv(max_len, 8) * d_model,
        transcendentals=2 * pl.cdiv(max_len, 8) * d_model,
        bytes_accessed=max_len * d_model * itemsize + 17 * d_model * 4,
    )

    return pl.pallas_call(
        _pe_kernel,
        out_shape=jax.ShapeDtypeStruct((max_len, d_model), dtype),
        grid_spec=pltpu.PrefetchScalarGridSpec(
            num_scalar_prefetch=0,
            grid=grid,
            in_specs=[
                pl.BlockSpec((1, d_model), lambda i: (0, 0)),   # inv_freq
                pl.BlockSpec((8, d_model), lambda i: (0, 0)),   # U table
                pl.BlockSpec((8, d_model), lambda i: (0, 0)),   # V table
            ],
            # No padding / no post-kernel crop: block last dim == d_model
            # (full-array-dim blocks are legal even when d_model % 128 != 0).
            out_specs=pl.BlockSpec((tile_rows, d_model), lambda i: (i, 0)),
            scratch_shapes=[
                pltpu.VMEM((q_blocks, d_model), jnp.float32),
                pltpu.VMEM((q_blocks, d_model), jnp.float32),
            ],
        ),
        compiler_params=pltpu.CompilerParams(dimension_semantics=("parallel",)),
        cost_estimate=cost,
    )(jnp.asarray(f_tab), jnp.asarray(u_tab), jnp.asarray(v_tab))


class PositionalEncoding:
    """JAX/Pallas port of the PyTorch module: the table is built ONCE here;
    forward(x) is a constant row slice, just like the original.
    Pass dtype=jnp.bfloat16 if the downstream `x + pe` add is bf16 (halves HBM
    writeback and the consumer's read traffic)."""

    def __init__(self, d_model: int, max_len: int, dtype=jnp.float32):
        self.d_model = d_model
        self.max_len = max_len
        self.encoding = jax.block_until_ready(
            build_sinusoidal_table(d_model, max_len, dtype))

    def forward(self, x: jax.Array) -> jax.Array:
        _, seq_len = x.shape
        assert seq_len <= self.max_len, "seq_len must not exceed max_len"
        return self.encoding[:seq_len, :]

    __call__ = forward


def _reference_f64(seq_len: int, d_model: int) -> np.ndarray:
    """Float64 reference mirroring the PyTorch __init__ construction."""
    pos = np.arange(seq_len, dtype=np.float64)[:, None]
    two_i = np.arange(0, d_model, 2, dtype=np.float64)[None, :]
    angle = pos / np.power(10000.0, two_i / d_model)
    enc = np.zeros((seq_len, d_model), np.float64)
    enc[:, 0::2] = np.sin(angle)
    enc[:, 1::2] = np.cos(angle)
    return enc


if __name__ == "__main__":
    key = jax.random.PRNGKey(0)

    # --- Small case: strict check (angles <= 7, so f32 error is ~1e-7). ---
    batch, seq_len, d_model, max_len = 2, 8, 32, 16
    # x's values are irrelevant to forward (only its shape matters).
    x = jax.random.randint(key, (batch, seq_len), 0, 100, dtype=jnp.int32)
    pe = PositionalEncoding(d_model, max_len)
    out = jax.block_until_ready(pe(x))
    assert out.shape == (seq_len, d_model), out.shape
    assert out.dtype == jnp.float32, out.dtype
    ref = _reference_f64(seq_len, d_model)
    assert np.allclose(np.asarray(out, np.float64), ref, atol=1e-5, rtol=1e-5), \
        "mismatch vs reference (small case)"

    # --- Larger case: d_model % 128 != 0 (full-width blocks, no crop),
    #     multi-step grid, positions up to ~1000. ---
    # Any float32 evaluation of sin(p * f) (including the PyTorch f32 table) has
    # an intrinsic error of a few ulps of the *angle*, i.e. O(p * eps_f32).  We
    # therefore compare against a float64 reference with a position-scaled
    # tolerance of ~8 ulp of the angle plus a small absolute floor.
    seq_len2, d_model2, max_len2 = 1000, 96, 1024
    x2 = jax.random.randint(key, (batch, seq_len2), 0, 100, dtype=jnp.int32)
    pe2 = PositionalEncoding(d_model2, max_len2)
    out2 = jax.block_until_ready(pe2(x2))
    assert out2.shape == (seq_len2, d_model2), out2.shape
    ref2 = _reference_f64(seq_len2, d_model2)
    err = np.abs(np.asarray(out2, np.float64) - ref2)
    pos = np.arange(seq_len2, dtype=np.float64)[:, None]
    tol = 2e-5 + 8.0 * float(np.finfo(np.float32).eps) * pos
    assert np.all(err <= tol), f"mismatch vs reference (large case), max err {err.max()}"

    print("KERNEL_OK")
</pallas_src>

<mosaic_0001>
module attributes {stable_mosaic.version = 11 : i64} {
  func.func @_pe_kernel(%arg0: i32, %arg1: memref<1x32xf32, #tpu.memory_space<vmem>>, %arg2: memref<8x32xf32, #tpu.memory_space<vmem>>, %arg3: memref<8x32xf32, #tpu.memory_space<vmem>>, %arg4: memref<8x32xf32, #tpu.memory_space<vmem>>, %arg5: memref<1x32xf32, #tpu.memory_space<vmem>>, %arg6: memref<1x32xf32, #tpu.memory_space<vmem>>) attributes {dimension_semantics = [#tpu.dimension_semantics<parallel>], iteration_bounds = array<i64: 2>, scalar_prefetch = 0 : i64, scratch_operands = 2 : i64, tpu.core_type = #tpu.core_type<tc>, window_params = [{pipeline_mode = #tpu.pipeline_mode<synchronous>, transform_indices = @transform_0, window_bounds = array<i64: 1, 32>}, {pipeline_mode = #tpu.pipeline_mode<synchronous>, transform_indices = @transform_1, window_bounds = array<i64: 8, 32>}, {pipeline_mode = #tpu.pipeline_mode<synchronous>, transform_indices = @transform_2, window_bounds = array<i64: 8, 32>}, {transform_indices = @transform_3, window_bounds = array<i64: 8, 32>}]} {
    %c8_i32 = arith.constant 8 : i32
    %0 = arith.muli %arg0, %c8_i32 : i32
    %1 = tpu.iota {dimensions = array<i32: 0>} : vector<1x1xi32>
    %c8_i32_0 = arith.constant 8 : i32
    %2 = vector.broadcast %c8_i32_0 : i32 to vector<1x1xi32>
    %3 = arith.muli %2, %1 : vector<1x1xi32>
    %4 = vector.broadcast %0 : i32 to vector<1x1xi32>
    %5 = arith.addi %4, %3 : vector<1x1xi32>
    %6 = arith.sitofp %5 : vector<1x1xi32> to vector<1x1xf32>
    %c0 = arith.constant 0 : index
    %c0_1 = arith.constant 0 : index
    %7 = vector.load %arg1[%c0, %c0_1] : memref<1x32xf32, #tpu.memory_space<vmem>>, vector<1x32xf32>
    %8 = vector.broadcast %6 : vector<1x1xf32> to vector<1x32xf32>
    %9 = arith.mulf %8, %7 : vector<1x32xf32>
    %10 = math.sin %9 : vector<1x32xf32>
    %c0_2 = arith.constant 0 : index
    %c0_3 = arith.constant 0 : index
    %11 = vector.load %arg5[%c0_2, %c0_3] : memref<1x32xf32, #tpu.memory_space<vmem>>, vector<1x32xf32>
    tpu.vector_store %arg5[%c0_2, %c0_3], %10 {strides = array<i32>} : memref<1x32xf32, #tpu.memory_space<vmem>>, vector<1x32xf32>,
    %cst = arith.constant 1.57079637 : f32
    %12 = vector.broadcast %cst : f32 to vector<1x32xf32>
    %13 = arith.addf %9, %12 : vector<1x32xf32>
    %14 = math.sin %13 : vector<1x32xf32>
    %c0_4 = arith.constant 0 : index
    %c0_5 = arith.constant 0 : index
    %15 = vector.load %arg6[%c0_4, %c0_5] : memref<1x32xf32, #tpu.memory_space<vmem>>, vector<1x32xf32>
    tpu.vector_store %arg6[%c0_4, %c0_5], %14 {strides = array<i32>} : memref<1x32xf32, #tpu.memory_space<vmem>>, vector<1x32xf32>,
    %c0_i32 = arith.constant 0 : i32
    %c8_i32_6 = arith.constant 8 : i32
    %16 = arith.muli %c0_i32, %c8_i32_6 : i32
    %17 = tpu.assume_multiple %16, 8 : i32
    %18 = arith.index_cast %c0_i32 : i32 to index
    %c0_7 = arith.constant 0 : index
    %19 = vector.load %arg5[%18, %c0_7] : memref<1x32xf32, #tpu.memory_space<vmem>>, vector<1x32xf32>
    %20 = arith.index_cast %c0_i32 : i32 to index
    %c0_8 = arith.constant 0 : index
    %21 = vector.load %arg6[%20, %c0_8] : memref<1x32xf32, #tpu.memory_space<vmem>>, vector<1x32xf32>
    %c0_9 = arith.constant 0 : index
    %c0_10 = arith.constant 0 : index
    %22 = vector.load %arg2[%c0_9, %c0_10] : memref<8x32xf32, #tpu.memory_space<vmem>>, vector<8x32xf32>
    %23 = vector.broadcast %19 : vector<1x32xf32> to vector<8x32xf32>
    %24 = arith.mulf %23, %22 : vector<8x32xf32>
    %c0_11 = arith.constant 0 : index
    %c0_12 = arith.constant 0 : index
    %25 = vector.load %arg3[%c0_11, %c0_12] : memref<8x32xf32, #tpu.memory_space<vmem>>, vector<8x32xf32>
    %26 = vector.broadcast %21 : vector<1x32xf32> to vector<8x32xf32>
    %27 = arith.mulf %26, %25 : vector<8x32xf32>
    %28 = arith.addf %24, %27 : vector<8x32xf32>
    %29 = arith.index_cast %17 : i32 to index
    %c0_13 = arith.constant 0 : index
    %30 = vector.load %arg4[%29, %c0_13] : memref<8x32xf32, #tpu.memory_space<vmem>>, vector<8x32xf32>
    tpu.vector_store %arg4[%29, %c0_13], %28 {strides = array<i32>} : memref<8x32xf32, #tpu.memory_space<vmem>>, vector<8x32xf32>,
    %c1_i32 = arith.constant 1 : i32
    return
  }
  func.func @transform_0(%arg0: i32) -> (i32, i32) {
    %c0_i32 = arith.constant 0 : i32
    %c0_i32_0 = arith.constant 0 : i32
    %c0_i32_1 = arith.constant 0 : i32
    return %c0_i32, %c0_i32_0 : i32, i32
  }
  func.func @transform_1(%arg0: i32) -> (i32, i32) {
    %c0_i32 = arith.constant 0 : i32
    %c0_i32_0 = arith.constant 0 : i32
    %c0_i32_1 = arith.constant 0 : i32
    return %c0_i32, %c0_i32_0 : i32, i32
  }
  func.func @transform_2(%arg0: i32) -> (i32, i32) {
    %c0_i32 = arith.constant 0 : i32
    %c0_i32_0 = arith.constant 0 : i32
    %c0_i32_1 = arith.constant 0 : i32
    return %c0_i32, %c0_i32_0 : i32, i32
  }
  func.func @transform_3(%arg0: i32) -> (i32, i32) {
    %c0_i32 = arith.constant 0 : i32
    %c0_i32_0 = arith.constant 0 : i32
    return %arg0, %c0_i32 : i32, i32
  }
}

</mosaic_0001>

<bundles_post_ra>
// kernel: tpu_custom_call.1
= control target key start
LH: loop header
LB: loop body
LE: loop exit
PB: predicated region body
PF: predicated region fallthrough
CT: control target
= control target key end

     0   :  { %8 = vsyncpa [#allocation5], 0  ;;  %s1034_s0 = inlined_call_operand.hbm [shape: f32[1,32], index: 0, kind: input, shape index: {}]   ;;  %s1035_s1 = inlined_call_operand.hbm [shape: f32[8,32], index: 1, kind: input, shape index: {}]   ;;  %s1036_s2 = inlined_call_operand.hbm [shape: f32[8,32], index: 2, kind: input, shape index: {}]   ;;  %s1037_s3 = inlined_call_operand.hbm [shape: f32[16,32], index: 3, kind: output, shape index: {}]  }
   0x1   :  { %9 = vsyncpa [#allocation8], 0 }
   0x2   :  { %10 = vsyncpa [#allocation6], 0 }
   0x3   :  { %12 = vsyncpa [#allocation6 + $0x1], 0  ;;  %s816_s12 = smov 0   ;;  %s818_s13 = smov 0  }
   0x4   :  { %s820_s14 = smov 0   ;;  %s822_s15 = smov 0  }
   0x5 LB: > { %s837_s16 = sadd.s32 4294967295, %s784_s15   ;;  %s521_s17 = sadd.s32 4294967294, %s784_s15   ;;  %s784_s15 = sphi %s822_s15, %s1055_s15   ;;  %s780_s14 = sphi %s820_s14, %s1054_s14   ;;  %s776_s13 = sphi %s818_s13, %s1053_s13   ;;  %s772_s12 = sphi %s816_s12, %s1052_s12  }
   0x6   : > { %s841_s18 = sadd.s32 1, %s784_s15   ;;  %s88_s19 = sadd.s32 1, %s780_s14 }
   0x7   : > { %s85_s20 = ssub.s32 %s784_s15, %s841_s18  ;;  %p98_p0 = scmp.ne.s32.totalorder %s780_s14, %s776_s13 }
   0x8   : > { %p86_p1 = scmp.eq.s32.totalorder %s85_s20, 0  ;;  %p99_p2 = scmp.eq.s32.totalorder %s837_s16, 1 }
   0x9   : > { %p104_p3 = scmp.ne.s32.totalorder %s776_s13, %s772_s12  ;;  %p105_p4 = scmp.eq.s32.totalorder %s521_s17, 1 }
   0xa   : > { %s852_s21 = scalar_select %p86_p1, %s780_s14, %s88_s19  }
   0xb   : > { %p854_p5 = por %p99_p2, %p98_p0  ;;  %p858_p6 = por %p105_p4, %p104_p3 }
   0xc   : > { %p522_p7 = scmp.ge.s32.totalorder %s784_s15, 1  ;;  %p112_p8 = scmp.lt.s32.totalorder %s784_s15, 3 }
   0xd   : > { %s1040_s22 = scalar_select %p854_p5, 1, 0 }
   0xe   : > { %s1041_s23 = scalar_select %p858_p6, 1, 0 }
   0xf   : > { %p1038_p9 = scmp.eq.s32.totalorder %s837_s16, 0  ;;  %p865_p10 = pnand %p522_p7, %p112_p8 }
  0x10   : > { %s786_s25 = smov [#allocation7]   ;;  %s787_s27 = smov [#allocation4]  }
  0x11   : > { %s136_s26 = sshll.u32 %s786_s25, 4  ;;  %p568_p11 = pneg %p865_p10  ;;  %s137_s26 = int_to_ptr.vmem [resolvable:$true] %s136_s26 }
  0x12   : > { %s125_s28 = sshll.u32 %s787_s27, 4  ;;  %s788_s30 = smov [#allocation9]   ;;  %s126_s28 = int_to_ptr.vmem [resolvable:$true] %s125_s28 }
  0x13   : > { %p873_p12 = pnand %p1038_p9, %p568_p11  ;;  %s147_s4 = sshll.u32 %s788_s30, 4  ;;  %s877_s4 = int_to_ptr.vmem [resolvable:$true] %s147_s4 }
  0x14   : > { %s649_s5 = scalar_lea.vmem %s137_s26, 128  ;;  %p657_p3 = scmp.lt.s32.totalorder %s137_s26, %s137_s26 }
  0x15   : > { %p640_p13 = pneg %p873_p12  ;;  %p650_p0 = scmp.ne.s32.totalorder %s137_s26, %s649_s5 }
  0x16   : > { %p658_p4 = scmp.lt.s32.totalorder %s649_s5, %s649_s5 }
  0x17   : > { %p652_p1 = pnand %p650_p0, %p640_p13 }
  0x18   : > { %p659_p7 = por %p658_p4, %p657_p3 }
  0x19   : > { %p653_p2 = pneg %p652_p1 }
  0x1b   : > { %p660_p8 = pnand %p659_p7, %p653_p2 }
  0x1d   : > { %663 = shalt.err (!%p660_p8)
}
  0x1e   : > { %574 = dma.hbm_to_vmem [thread:$0]  (!%p873_p12), %s1035_s1, 128, %s137_s26, [#allocation8]  }
  0x1f   : > { %s675_s8 = scalar_lea.vmem %s126_s28, 16  ;;  %s682_s9 = scalar_lea.vmem %s126_s28, 32 }
  0x20   : > { %p676_p11 = scmp.ne.s32.totalorder %s126_s28, %s675_s8  ;;  %p683_p0 = scmp.lt.s32.totalorder %s126_s28, %s126_s28 }
  0x21   : > { %p684_p1 = scmp.lt.s32.totalorder %s682_s9, %s675_s8 }
  0x22   : > { %p678_p9 = pnand %p676_p11, %p640_p13 }
  0x23   : > { %p685_p5 = por %p684_p1, %p683_p0 }
  0x24   : > { %p679_p6 = pneg %p678_p9 }
  0x26   : > { %p686_p3 = pnand %p685_p5, %p679_p6 }
  0x28   : > { %689 = shalt.err (!%p686_p3)
}
  0x29   : > { %571 = dma.hbm_to_vmem [thread:$0]  (!%p873_p12), %s1034_s0, 16, %s126_s28, [#allocation5]  }
  0x2a   : > { %s701_s17 = scalar_lea.vmem %s877_s4, 128  ;;  %p709_p7 = scmp.lt.s32.totalorder %s877_s4, %s877_s4 }
  0x2b   : > { %p702_p2 = scmp.ne.s32.totalorder %s877_s4, %s701_s17  ;;  %p710_p5 = scmp.lt.s32.totalorder %s701_s17, %s701_s17 }
  0x2d   : > { %p704_p9 = pnand %p702_p2, %p640_p13  ;;  %p711_p6 = por %p710_p5, %p709_p7 }
  0x2f   : > { %p705_p4 = pneg %p704_p9 }
  0x31   : > { %p712_p8 = pnand %p711_p6, %p705_p4 }
  0x33   : > { %715 = shalt.err (!%p712_p8)
}
  0x34   : > { %577 = dma.hbm_to_vmem [thread:$0]  (!%p873_p12), %s1036_s2, 128, %s877_s4, [#allocation8]  }
  0x35   : > { %160 = sbr.rel (%p865_p10) target bundleno = 192 (0xc0), region = 32  ;;  %p1044_p11 = scmp.eq.s32.totalorder (!%p865_p10), %s837_s16, 0 }
  0x3a   : > { %759 = dma.done.wait (%p1044_p11), [#allocation5], 16   ;;  %p1045_p13 = pmov %p1044_p11 }
  0x3b   : > { %p1046_p0 = pmov %p1044_p11 }
  0x3c   : > { %761 = vsyncadd (%p1045_p13), [#allocation5], 4294967280 }
  0x3d   : > { %763 = dma.done.wait (%p1046_p0), [#allocation8], 256   ;;  %p1047_p1 = pmov %p1046_p0 }
  0x3e   : > { %s531_s25 = sshll.u32 %s837_s16, 3  ;;  %v188_v0 = vlaneseq  ;;  %v194_v5 = vld [vmem:[#allocation4] sm:$0x1]  ;;  %v789_v28 = vmov 683565275   ;;  %s184_s24 = sand.u32 1, %s776_s13  }
  0x3f   : > { %765 = vsyncadd (%p1047_p1), [#allocation8], 4294967040  ;;  %v191_v2 = vstv %s531_s25  ;;  %v790_v30 = vmov 2475754826   ;;  %v791_v32 = vmov 2131351028  }
  0x40   : > { %v189_v1 = vshrl.u32 %v188_v0, 7  ;;  %v792_v34 = vmov 2102212464   ;;  %v793_v36 = vmov 920167782   ;;  %s530_s26 = sshll.u32 %s184_s24, 3 }
  0x41   : > { %v794_v43 = vmov 1326507024   ;;  %s186_s27 = scalar_lea.vmem [#allocation10], %s530_s26  ;;  %s543_s29 = sshll.u32 %s837_s16, 7 }
  0x42   : > { %v190_v3 = vmul.u32 8, %v189_v1  ;;  %s443_s28 = sshll.u32 %s186_s27, 4  ;;  %s441_s5 = scalar_lea.hbm %s1037_s3, %s543_s29  ;;  %s444_s28 = int_to_ptr.vmem [resolvable:$true] %s443_s28 }
  0x43   : > { %s430_s6 = scalar_lea.sflag [#allocation6], %s184_s24  ;;  %s716_s7 = scalar_lea.vmem %s444_s28, 128 }
  0x44   : > { %v192_v4 = vadd.s32 %v191_v2, %v190_v3  ;;  %p717_p10 = scmp.ne.s32.totalorder %s444_s28, %s716_s7  ;;  %p1050_p12 = scmp.ne.s32.totalorder %s1040_s22, 0 }
  0x45   : > { %s795_s8 = smov [#allocation10]  }
  0x46   : > { %v193_v6 = vcvt.s32.f32 %v192_v4  ;;  %p718_p3 = pnand %p717_p10, %p1050_p12  ;;  %s720_s9 = sshll.u32 %s795_s8, 4  ;;  %s721_s9 = int_to_ptr.vmem [resolvable:$false] %s720_s9 }
  0x47   : > { %s722_s10 = scalar_lea.vmem %s721_s9, 256  ;;  %p723_p9 = scmp.lt.s32.totalorder %s444_s28, %s721_s9 }
  0x48   : > { %v921_v7 = vmul.f32 %v194_v5, %v193_v6  ;;  %p719_p2 = pneg %p718_p3  ;;  %p724_p4 = scmp.lt.s32.totalorder %s722_s10, %s716_s7 }
  0x4a   : > { %v196_v8 = vand.u32 2147483647, %v921_v7  ;;  %v199_v9 = vand.u32 2139095040, %v921_v7  ;;  %v926_v10 = vadd.f32 1.5707964, %v921_v7  ;;  %vm198_vm14 = vcmp.lt.s32.totalorder %v921_v7, 0  ;;  %p725_p7 = por %p724_p4, %p723_p9 }
  0x4c   : > { %v200_v11 = vshrl.u32 %v199_v9, 23  ;;  %v203_v12 = vand.u32 8388607, %v196_v8  ;;  %v303_v13 = vand.u32 2147483647, %v926_v10  ;;  %v306_v14 = vand.u32 2139095040, %v926_v10  ;;  %p726_p5 = pnand %p725_p7, %p719_p2 }
  0x4d   : > { %vm197_vm15 = vcmp.le.f32.partialorder %v196_v8, 0.7853982 }
  0x4e   : > { %v532_v15 = vadd.s32 4294967169, %v200_v11  ;;  %v307_v16 = vshrl.u32 %v306_v14, 23  ;;  %v204_v18 = vor.u32 8388608, %v203_v12  ;;  %v934_v20 = vand.u32 8388607, %v303_v13 }
  0x50   : > { %v206_v17 = vadd.s32 1, %v532_v15  ;;  %v536_v19 = vadd.s32 4294967169, %v307_v16  ;;  %v936_v25 = vshll.u32 %v204_v18, 8  ;;  %v311_v26 = vor.u32 8388608, %v934_v20 }
  0x52   : > { %vm207_vm0 = vcmp.gt.s32.totalorder %v206_v17, 0  ;;  %v313_v22 = vadd.s32 1, %v536_v19 }
  0x53   : > { %v208_v21 = vsel %vm207_vm0, %v206_v17, 0  ;;  %vm305_vm0 = vcmp.lt.s32.totalorder %v926_v10, 0 }
  0x54   : > { %v209_v23 = vshrl.u32 %v208_v21, 5  ;;  %v210_v24 = vand.u32 31, %v208_v21  ;;  %vm314_vm1 = vcmp.gt.s32.totalorder %v313_v22, 0 }
  0x55   : > { %v315_v48 = vsel %vm314_vm1, %v313_v22, 0  ;;  %vm987_vm1 = vcmp.le.f32.partialorder %v303_v13, 0.7853982 }
  0x56   : > { %v211_v27 = vsub.s32 32, %v210_v24  ;;  %v213_v29 = vshll.u32 %v789_v28, %v210_v24  ;;  %v216_v31 = vshll.u32 %v790_v30, %v210_v24  ;;  %v219_v33 = vshll.u32 %v791_v32, %v210_v24 }
  0x57   : > { %v222_v35 = vshll.u32 %v792_v34, %v210_v24  ;;  %v225_v37 = vshll.u32 %v793_v36, %v210_v24  ;;  %vm228_vm2 = vcmp.lt.s32.totalorder %v209_v23, 1  ;;  %vm229_vm3 = vcmp.lt.s32.totalorder %v209_v23, 2 }
  0x58   : > { %v212_v38 = vshrl.u32 %v789_v28, %v211_v27  ;;  %v214_v39 = vshrl.u32 %v790_v30, %v211_v27  ;;  %v217_v40 = vshrl.u32 %v791_v32, %v211_v27  ;;  %v220_v41 = vshrl.u32 %v792_v34, %v211_v27 }
  0x59   : > { %v223_v42 = vshrl.u32 %v793_v36, %v211_v27  ;;  %v226_v44 = vshrl.u32 %v794_v43, %v211_v27  ;;  %vm230_vm4 = vcmp.lt.s32.totalorder %v209_v23, 3  ;;  %vm231_vm5 = vcmp.lt.s32.totalorder %v209_v23, 4 }
  0x5a   : > { %v215_v45 = vor.u32 %v214_v39, %v213_v29  ;;  %v218_v46 = vor.u32 %v217_v40, %v216_v31  ;;  %v221_v47 = vor.u32 %v220_v41, %v219_v33  ;;  %v316_v51 = vshrl.u32 %v315_v48, 5 }
  0x5b   : > { %v224_v49 = vor.u32 %v223_v42, %v222_v35  ;;  %v227_v50 = vor.u32 %v226_v44, %v225_v37  ;;  %v317_v52 = vand.u32 31, %v315_v48 }
  0x5c   : > { %v232_v53 = vsel %vm228_vm2, %v212_v38, %v215_v45  ;;  %v233_v54 = vsel %vm231_vm5, %v221_v47, 2102212464  ;;  %v236_v55 = vsel %vm228_vm2, %v215_v45, %v218_v46  ;;  %v240_v56 = vsel %vm228_vm2, %v218_v46, %v221_v47 }
  0x5d   : > { %v234_v57 = vsel %vm230_vm4, %v218_v46, %v233_v54  ;;  %v237_v58 = vsel %vm231_vm5, %v224_v49, 920167782  ;;  %v241_v59 = vsel %vm231_vm5, %v227_v50, 1326507024  ;;  %v318_v60 = vsub.s32 32, %v317_v52 }
  0x5e   : > { %v235_v61 = vsel %vm229_vm3, %v232_v53, %v234_v57  ;;  %v238_v62 = vsel %vm230_vm4, %v221_v47, %v237_v58  ;;  %v242_v63 = vsel %vm230_vm4, %v224_v49, %v241_v59  ;;  %v320_v0 = vshll.u32 %v789_v28, %v317_v52 }
  0x5f   : > { %v239_v1 = vsel %vm229_vm3, %v236_v55, %v238_v62  ;;  %v243_v2 = vsel %vm229_vm3, %v240_v56, %v242_v63  ;;  %v251_v3 = vmul.u32 %v936_v25, %v235_v61  ;;  %v319_v4 = vshrl.u32 %v789_v28, %v318_v60 }
  0x60   : > { %v951_v5 = vmul.u32.u64.low %v936_v25, %v243_v2  ;;  %v952_v6 = vmul.u32.u64.high %v936_v25, %v243_v2, %v951_v5  ;;  %v955_v9 = vmul.u32.u64.low %v936_v25, %v239_v1  ;;  %v956_v11 = vmul.u32.u64.high %v936_v25, %v239_v1, %v955_v9 }
  0x61   : > { %v321_v12 = vshrl.u32 %v790_v30, %v318_v60  ;;  %v323_v14 = vshll.u32 %v790_v30, %v317_v52  ;;  %v324_v15 = vshrl.u32 %v791_v32, %v318_v60  ;;  %v326_v16 = vshll.u32 %v791_v32, %v317_v52 }
  0x62   : > { %v327_v17 = vshrl.u32 %v792_v34, %v318_v60  ;;  %v329_v18 = vshll.u32 %v792_v34, %v317_v52  ;;  %v330_v19 = vshrl.u32 %v793_v36, %v318_v60  ;;  %v332_v21 = vshll.u32 %v793_v36, %v317_v52 }
  0x63   : > { %v322_v22 = vor.u32 %v321_v12, %v320_v0  ;;  %v325_v23 = vor.u32 %v324_v15, %v323_v14  ;;  %v333_v24 = vshrl.u32 %v794_v43, %v318_v60  ;;  %vm335_vm6 = vcmp.lt.s32.totalorder %v316_v51, 1 }
  0x64   : > { %vm253_vm7 = vc.u32 %v952_v6, %v955_v9  ;;  %v254_v27 = vadd.s32 1, %v956_v11  ;;  %v328_v28 = vor.u32 %v327_v17, %v326_v16  ;;  %v351_v25 = vshll.u32 %v311_v26, 8 }
  0x65   : > { %v331_v29 = vor.u32 %v330_v19, %v329_v18  ;;  %v334_v30 = vor.u32 %v333_v24, %v332_v21  ;;  %vm336_vm8 = vcmp.lt.s32.totalorder %v316_v51, 2  ;;  %vm337_vm9 = vcmp.lt.s32.totalorder %v316_v51, 3 }
  0x66   : > { %v255_v31 = vsel %vm253_vm7, %v254_v27, %v956_v11  ;;  %vm338_vm10 = vcmp.lt.s32.totalorder %v316_v51, 4  ;;  %v339_v32 = vsel %vm335_vm6, %v319_v4, %v322_v22  ;;  %v343_v33 = vsel %vm335_vm6, %v322_v22, %v325_v23 }
  0x67   : > { %v256_v34 = vadd.s32 %v255_v31, %v251_v3  ;;  %v340_v35 = vsel %vm338_vm10, %v328_v28, 2102212464  ;;  %v344_v36 = vsel %vm338_vm10, %v331_v29, 920167782  ;;  %v347_v37 = vsel %vm335_vm6, %v325_v23, %v328_v28 }
  0x68   : > { %v341_v38 = vsel %vm337_vm9, %v325_v23, %v340_v35  ;;  %v345_v39 = vsel %vm337_vm9, %v328_v28, %v344_v36  ;;  %v348_v20 = vsel %vm338_vm10, %v334_v30, 1326507024  ;;  %v252_v62 = vadd.s32 %v955_v9, %v952_v6 }
  0x69   : > { %v257_v26 = vadd.s32 536870912, %v256_v34  ;;  %v346_v40 = vsel %vm336_vm8, %v343_v33, %v345_v39  ;;  %v349_v41 = vsel %vm337_vm9, %v331_v29, %v348_v20  ;;  %v342_v42 = vsel %vm336_vm8, %v339_v32, %v341_v38 }
  0x6a   : > { %v350_v43 = vsel %vm336_vm8, %v347_v37, %v349_v41  ;;  %v969_v44 = vmul.u32.u64.low %v351_v25, %v346_v40  ;;  %v970_v45 = vmul.u32.u64.high %v351_v25, %v346_v40, %v969_v44  ;;  %v358_v50 = vmul.u32 %v351_v25, %v342_v42 }
  0x6b   : > { %v258_v46 = vshrl.u32 %v257_v26, 30  ;;  %v972_v47 = vmul.u32.u64.low %v351_v25, %v350_v43  ;;  %v973_v48 = vmul.u32.u64.high %v351_v25, %v350_v43, %v972_v47  ;;  %vm288_vm5 = vweird.f32 %v921_v7 }
  0x6c   : > { %v361_v52 = vadd.s32 1, %v970_v45  ;;  %vm300_vm6 = vcmask 253952   ;;  %vm395_vm10 = vweird.f32 %v926_v10 }
  0x6d   : > { %v259_v49 = vshll.u32 %v258_v46, 30  ;;  %vm360_vm11 = vc.u32 %v973_v48, %v969_v44  ;;  %v359_v22 = vadd.s32 %v969_v44, %v973_v48  ;;  %v282_v23 = vsub.s32 4, %v258_v46 }
  0x6e   : > { %v362_v54 = vsel %vm360_vm11, %v361_v52, %v970_v45  ;;  %vm427_vm11 = vcmask 261120  }
  0x6f   : > { %v260_v53 = vsub.s32 %v256_v34, %v259_v49  ;;  %v363_v56 = vadd.s32 %v362_v54, %v358_v50  ;;  %v283_v32 = vsel %vm198_vm14, %v282_v23, %v258_v46 }
  0x70   : > { %v285_v38 = vsel %vm197_vm15, 0, %v283_v32 }
  0x71   : > { %v262_v55 = vsub.s32 0, %v260_v53  ;;  %v364_v57 = vadd.s32 536870912, %v363_v56  ;;  %v289_v20 = vadd.s32 3, %v285_v38 }
  0x73   : > { %v533_v51 = vmin.u32 %v262_v55, %v260_v53  ;;  %v365_v59 = vshrl.u32 %v364_v57, 30  ;;  %v290_v42 = vand.u32 3, %v289_v20 }
  0x75   : > { %v264_v58 = vclz %v533_v51  ;;  %v366_v61 = vshll.u32 %v365_v59, 30  ;;  %v389_v8 = vsub.s32 4, %v365_v59  ;;  %vm295_vm2 = vcmp.eq.s32.totalorder %v290_v42, 2 }
  0x76   : > { %vm292_vm3 = vcmp.eq.s32.totalorder %v290_v42, 0  ;;  %vm291_vm4 = vcmp.lt.s32.totalorder %v290_v42, 2 }
  0x77   : > { %v534_v60 = vadd.s32 4294967294, %v264_v58  ;;  %v367_v0 = vsub.s32 %v363_v56, %v366_v61  ;;  %v390_v44 = vsel %vm305_vm0, %v389_v8, %v365_v59 }
  0x78   : > { %v392_v47 = vsel %vm987_vm1, 0, %v390_v44 }
  0x79   : > { %vm535_vm12 = vcmp.lt.s32.totalorder %v534_v60, 0  ;;  %v369_v4 = vsub.s32 0, %v367_v0  ;;  %v396_v52 = vadd.s32 3, %v392_v47 }
  0x7a   : > { %v267_v63 = vsel %vm535_vm12, 0, %v534_v60 }
  0x7b   : > { %v268_v1 = vsub.s32 32, %v267_v63  ;;  %v269_v2 = vshll.u32 %v260_v53, %v267_v63  ;;  %v272_v3 = vsub.s32 4294967266, %v267_v63  ;;  %v537_v12 = vmin.u32 %v369_v4, %v367_v0 }
  0x7c   : > { %v397_v56 = vand.u32 3, %v396_v52 }
  0x7d   : > { %v270_v5 = vshrl.u32 %v252_v62, %v268_v1  ;;  %v273_v11 = vadd.s32 127, %v272_v3  ;;  %v371_v16 = vclz %v537_v12  ;;  %v418_v1 = vld [vmem:[#allocation9] sm:$0xff] }
  0x7e   : > { %vm402_vm7 = vcmp.eq.s32.totalorder %v397_v56, 2  ;;  %vm399_vm8 = vcmp.eq.s32.totalorder %v397_v56, 0  ;;  %vm398_vm9 = vcmp.lt.s32.totalorder %v397_v56, 2 }
  0x7f   : > { %v271_v14 = vor.u32 %v270_v5, %v269_v2  ;;  %v274_v15 = vshll.u32 %v273_v11, 23  ;;  %v538_v19 = vadd.s32 4294967294, %v371_v16 }
  0x81   : > { %v275_v17 = vor.u32 4788187, %v274_v15  ;;  %v278_v18 = vcvt.s32.f32 %v271_v14  ;;  %vm539_vm13 = vcmp.lt.s32.totalorder %v538_v19, 0 }
  0x82   : > { %v374_v9 = vsel %vm539_vm13, 0, %v538_v19 }
  0x83   : > { %v276_v21 = vand.u32 2147483647, %v275_v17  ;;  %v375_v24 = vsub.s32 32, %v374_v9  ;;  %v376_v27 = vshll.u32 %v367_v0, %v374_v9  ;;  %v379_v28 = vsub.s32 4294967266, %v374_v9  ;;  %v410_v0 = vld [vmem:[#allocation7] sm:$0xff] }
  0x85   : > { %v279_v6 = vmul.f32 %v278_v18, %v276_v21  ;;  %v377_v29 = vshrl.u32 %v359_v22, %v375_v24  ;;  %v380_v30 = vadd.s32 127, %v379_v28 }
  0x87   : > { %v280_v25 = vxor.u32 2147483648, %v279_v6  ;;  %v378_v34 = vor.u32 %v377_v29, %v376_v27  ;;  %v381_v35 = vshll.u32 %v380_v30, 23 }
  0x89   : > { %v281_v31 = vsel %vm198_vm14, %v280_v25, %v279_v6  ;;  %v382_v36 = vor.u32 4788187, %v381_v35  ;;  %v385_v37 = vcvt.s32.f32 %v378_v34 }
  0x8a   : > { %v284_v33 = vsel %vm197_vm15, %v921_v7, %v281_v31 }
  0x8b   : > { %630 = vcosq.f32 %v284_v33  ;;  %v383_v39 = vand.u32 2147483647, %v382_v36 }
  0x8c   : > { %632 = vsinq.f32 %v284_v33 }
  0x8d   : > { %v386_v26 = vmul.f32 %v385_v37, %v383_v39 }
  0x8f   : > { %v387_v41 = vxor.u32 2147483648, %v386_v26 }
  0x91   : > { %v388_v43 = vsel %vm305_vm0, %v387_v41, %v386_v26 }
  0x92   : > { %v391_v45 = vsel %vm987_vm1, %v926_v10, %v388_v43 }
  0x93   : > { %634 = vcosq.f32 %v391_v45 }
  0x94   : > { %636 = vsinq.f32 %v391_v45 }
  0x98   : > { %v631_v46 = vpop.eup %630 }
  0x99   : > { %v633_v48 = vpop.eup %632  ;;  %v296_v13 = vxor.u32 2147483648, %v631_v46 }
  0x9a   : > { %v293_v49 = vxor.u32 2147483648, %v633_v48 }
  0x9b   : > { %v297_v50 = vsel %vm295_vm2, %v296_v13, %v633_v48 }
  0x9c   : > { %v294_v53 = vsel %vm292_vm3, %v631_v46, %v293_v49 }
  0x9d   : > { %v298_v54 = vsel %vm291_vm4, %v294_v53, %v297_v50 }
  0x9e   : > { %v299_v55 = vsel %vm288_vm5, nan, %v298_v54 }
  0x9f   : > { %301 = vst.msk [vmem:[#allocation2] sm:$0x1] %vm300_vm6, %v299_v55 }
  0xa0   : > { %v635_v51 = vpop.eup %634 }
  0xa1   : > { %v637_v57 = vpop.eup %636  ;;  %v403_v58 = vxor.u32 2147483648, %v635_v51 }
  0xa2   : > { %v400_v59 = vxor.u32 2147483648, %v637_v57 }
  0xa3   : > { %v404_v7 = vsel %vm402_vm7, %v403_v58, %v637_v57 }
  0xa4   : > { %v401_v60 = vsel %vm399_vm8, %v635_v51, %v400_v59 }
  0xa5   : > { %v405_v61 = vsel %vm398_vm9, %v401_v60, %v404_v7 }
  0xa6   : > { %v406_v62 = vsel %vm395_vm10, nan, %v405_v61  ;;  %v540_v63 = vld [vmem:[#allocation2] ss:$0 sm:$0xff] }
  0xa7   : > { %407 = vst.msk [vmem:[#allocation3] sm:$0x1] %vm300_vm6, %v406_v62  ;;  %v417_v2 = vmul.f32 %v540_v63, %v410_v0 }
  0xae   : > { %v541_v3 = vld [vmem:[#allocation3] ss:$0 sm:$0xff] }
  0xaf   : > { %v425_v4 = vmul.f32 %v541_v3, %v418_v1 }
  0xb1   : > { %v426_v10 = vadd.f32 %v425_v4, %v417_v2 }
  0xb3   : > { %428 = vst.msk [vmem:[%s186_s27] sm:$0xff] %vm427_vm11, %v426_v10 }
  0xb4   : > { %729 = shalt.err (!%p726_p5)
}
  0xb5   : > { %s730_s16 = scalar_lea.hbm %s441_s5, 128  ;;  %s734_s19 = scalar_lea.hbm %s1037_s3, 256 }
  0xb6   : > { %p731_p6 = scmp.ne.s32.totalorder %s441_s5, %s730_s16  ;;  %p735_p13 = scmp.lt.s32.totalorder %s441_s5, %s1037_s3 }
  0xb7   : > { %p736_p0 = scmp.lt.s32.totalorder %s734_s19, %s730_s16 }
  0xb8   : > { %p732_p8 = pnand %p731_p6, %p1050_p12 }
  0xb9   : > { %p737_p1 = por %p736_p0, %p735_p13 }
  0xba   : > { %p733_p11 = pneg %p732_p8 }
  0xbc   : > { %p738_p10 = pnand %p737_p1, %p733_p11 }
  0xbe   : > { %741 = shalt.err (!%p738_p10)
}
  0xbf   : > { %566 = dma.vmem_to_hbm [thread:$0]  (%p1050_p12), %s444_s28, 128, %s441_s5, %s430_s6  }
  0xc0 PF: > { %p588_p3 = scmp.ge.s32.totalorder %s784_s15, 2  ;;  %s455_s24 = sand.u32 1, %s772_s12  }
  0xc1   : > { %p1051_p2 = scmp.ne.s32.totalorder %s1041_s23, 0  ;;  %s456_s26 = scalar_lea.sflag [#allocation6], %s455_s24 }
  0xc3   : > { %p579_p9 = pnand %p588_p3, %p1051_p2 }
  0xc5   : > { %p580_p4 = pneg %p579_p9 }
  0xc7   : > { %767 = dma.done.wait (%p580_p4), %s456_s26, 128  }
  0xc8   : > { %769 = vsyncadd (%p580_p4), %s456_s26, 4294967168  ;;  %p15_p7 = scmp.ge.s32.totalorder %s841_s18, 4   ;;  %s1052_s12 = smov %s776_s13 }
  0xc9   : > { %s1053_s13 = smov %s780_s14  ;;  %s1054_s14 = smov %s852_s21 }
  0xca   : > { %s1055_s15 = smov %s841_s18  ;;  %17 = sbr.rel (!%p15_p7) target bundleno = 5 (0x5), region = 77 }
  0xcf   :  { %461 = vsyncpa [#allocation5], 1 }
  0xd0   :  { %463 = vsyncpa [#allocation5 + $0x1], 1 }
  0xd1   :  { %464 = vsyncpa [#allocation8], 1 }
  0xd2   :  { %465 = vsyncpa [#allocation6], 1 }
  0xd3   :  { %467 = vsyncpa [#allocation6 + $0x1], 1 }

</bundles_post_ra>
